<compile_context>
chip_gen: v6e
topology: v6e:2x2x1
jax: 0.10.0
libtpu: 0.0.40
codegen_flags: <defaults>
</compile_context>

<pallas_src>
import functools

import jax
import jax.numpy as jnp
from jax.experimental import pallas as pl
from jax.experimental.pallas import tpu as pltpu

DENSE_BETA = 0.5   # PathSRGAN(dense_beta=0.5) default
INPUT_NUM = 1      # stage1_eye in_channels = input_num * 3

_VMEM_BLOCK_BUDGET = 3 * 1024 * 1024   # per-operand block budget (bytes)


def _round_up(x, m):
    return ((x + m - 1) // m) * m


# ---------------------------------------------------------------------------
# Pallas kernel: tiled MXU matmul with fused bias + activation + residual
# epilogue.  grid = (M_tiles, N_tiles, K_tiles); the f32 output block is
# VMEM-resident across K (its index map ignores k) and is the accumulator.
# ---------------------------------------------------------------------------
def _conv_matmul_kernel(*refs, act, slope, act_pos, res_scale, has_res):
    if has_res:
        a_ref, b_ref, bias_ref, res_ref, o_ref = refs
    else:
        a_ref, b_ref, bias_ref, o_ref = refs
        res_ref = None

    k = pl.program_id(2)
    prod = jnp.dot(a_ref[...], b_ref[...], preferred_element_type=jnp.float32)

    @pl.when(k == 0)
    def _init():
        o_ref[...] = prod

    @pl.when(k > 0)
    def _accumulate():
        o_ref[...] = o_ref[...] + prod

    @pl.when(k == pl.num_programs(2) - 1)
    def _epilogue():
        def act_fn(v):
            if act == "leaky":            # LeakyReLU / scalar PReLU
                return jnp.where(v > 0, v, slope * v)
            if act == "sigmoid":          # exp + approx reciprocal -> EUP slots
                return pl.reciprocal(1.0 + jnp.exp(-v), approx=True)
            return v

        y = o_ref[...] + bias_ref[...]
        if act_pos == "pre":
            y = act_fn(y)
        if has_res:
            y = res_ref[...] + res_scale * y
        if act_pos == "post":
            y = act_fn(y)
        o_ref[...] = y


@functools.partial(jax.jit,
                   static_argnames=("act", "slope", "res_scale", "act_pos"))
def conv2d_same_pallas(x, w, b, res=None, *, act="none", slope=0.0,
                       res_scale=1.0, act_pos="pre"):
    """NHWC stride-1 'same' conv: im2col + Pallas matmul (bf16 operands, f32 acc).

    Epilogue fuses bias, activation (pre or post residual) and an optional
    residual add `res + res_scale * (...)`.
    """
    n, h, wd, cin = x.shape
    ksz = w.shape[0]
    cout = w.shape[3]
    pad = ksz // 2

    # im2col: taps (kh, kw) major, input channel minor  -> A: (M, K) bf16.
    # TODO(synk): an in-kernel ksz*ksz tap accumulation over the padded NHWC input
    # would remove the ksz^2 im2col HBM blow-up (worst for the 9x9/7x7 heads), but
    # needs overlapping/halo input windows and is not implemented here.
    xp = jnp.pad(x.astype(jnp.bfloat16), ((0, 0), (pad, pad), (pad, pad), (0, 0)))
    cols = [xp[:, i:i + h, j:j + wd, :] for i in range(ksz) for j in range(ksz)]
    a = jnp.concatenate(cols, axis=-1).reshape(n * h * wd, ksz * ksz * cin)

    bmat = w.astype(jnp.bfloat16).reshape(ksz * ksz * cin, cout)      # (K, N)
    bias = b.astype(jnp.float32).reshape(1, cout)

    M, K = a.shape
    N = cout
    has_res = res is not None

    # ---- tile / padding selection (avoid padded copies wherever legal) ----
    tm = min(256, _round_up(M, 8))
    Mp = _round_up(M, tm)

    if N >= 128:                               # lane-dense tiles
        Np = _round_up(N, 128)
        tn = 512 if Np % 512 == 0 else (256 if Np % 256 == 0 else 128)
    elif N % 8 == 0:                           # e.g. 64: full-dim block, no pad
        Np, tn = N, N
    else:                                      # tiny heads (cout == 3)
        Np, tn = 128, 128

    Kp = _round_up(K, 128)
    if tm * Kp * 2 <= _VMEM_BLOCK_BUDGET and Kp * tn * 2 <= _VMEM_BLOCK_BUDGET:
        tk = Kp                                # single full-extent K block
    else:
        q = Kp // 128
        limit = max(1, min(_VMEM_BLOCK_BUDGET // (tm * 2),
                           _VMEM_BLOCK_BUDGET // (tn * 2)) // 128)
        d = max(dd for dd in range(1, q + 1) if q % dd == 0 and dd <= limit)
        tk = 128 * d

    if (Mp, Kp) != (M, K):
        a = jnp.pad(a, ((0, Mp - M), (0, Kp - K)))
    if (Kp, Np) != (K, N):
        bmat = jnp.pad(bmat, ((0, Kp - K), (0, Np - N)))
    if Np != N:
        bias = jnp.pad(bias, ((0, 0), (0, Np - N)))

    operands = [a, bmat, bias]
    in_specs = [
        pl.BlockSpec((tm, tk), lambda i, j, k: (i, k)),
        pl.BlockSpec((tk, tn), lambda i, j, k: (k, j)),
        pl.BlockSpec((1, tn), lambda i, j, k: (0, j)),
    ]
    if has_res:
        r = res.astype(jnp.float32).reshape(M, N)
        if (Mp, Np) != (M, N):
            r = jnp.pad(r, ((0, Mp - M), (0, Np - N)))
        operands.append(r)
        in_specs.append(pl.BlockSpec((tm, tn), lambda i, j, k: (i, j)))

    grid = (Mp // tm, Np // tn, Kp // tk)
    out = pl.pallas_call(
        functools.partial(_conv_matmul_kernel, act=act, slope=float(slope),
                          act_pos=act_pos, res_scale=float(res_scale),
                          has_res=has_res),
        out_shape=jax.ShapeDtypeStruct((Mp, Np), jnp.float32),
        grid_spec=pltpu.PrefetchScalarGridSpec(
            num_scalar_prefetch=0,
            grid=grid,
            in_specs=in_specs,
            out_specs=pl.BlockSpec((tm, tn), lambda i, j, k: (i, j)),
        ),
        # Worst-case double-buffered blocks stay well under the default scoped
        # VMEM limit on v5e/v6e/v7x -> no vmem_limit override (v7x has only
        # 64 MiB physical VMEM per TensorCore).
        compiler_params=pltpu.CompilerParams(
            dimension_semantics=("parallel", "parallel", "arbitrary"),
        ),
    )(*operands)

    if (Mp, Np) != (M, N):
        out = out[:M, :N]
    return out.reshape(n, h, wd, cout)


# ---------------------------------------------------------------------------
# Reference convolution (same bf16-operand / f32-accumulation precision and
# the same fused-epilogue semantics).
# ---------------------------------------------------------------------------
def conv2d_same_reference(x, w, b, res=None, *, act="none", slope=0.0,
                          res_scale=1.0, act_pos="pre"):
    y = jax.lax.conv_general_dilated(
        x.astype(jnp.bfloat16), w.astype(jnp.bfloat16),
        window_strides=(1, 1), padding="SAME",
        dimension_numbers=("NHWC", "HWIO", "NHWC"),
        preferred_element_type=jnp.float32)
    y = y + b.astype(jnp.float32)[None, None, None, :]

    def act_fn(v):
        if act == "leaky":
            return jnp.where(v > 0, v, slope * v)
        if act == "sigmoid":
            return jax.nn.sigmoid(v)
        return v

    if act_pos == "pre":
        y = act_fn(y)
    if res is not None:
        y = res + res_scale * y
    if act_pos == "post":
        y = act_fn(y)
    return y


# ---------------------------------------------------------------------------
# Plain-JAX data-movement glue (no compute worth a kernel at these sizes).
# ---------------------------------------------------------------------------
def _avg_pool2(x):
    n, h, w, c = x.shape
    return x.reshape(n, h // 2, 2, w // 2, 2, c).mean(axis=(2, 4))


def _upsample_nearest2(x):          # F.interpolate(scale_factor=2), mode='nearest'
    return jnp.repeat(jnp.repeat(x, 2, axis=1), 2, axis=2)


def _pixel_shuffle2(x):
    # PyTorch PixelShuffle(2): out[n, h*2+i, w*2+j, c] = in[n, h, w, c*4 + i*2 + j]
    n, h, w, c4 = x.shape
    c = c4 // 4
    x = x.reshape(n, h, w, c, 2, 2)
    x = jnp.transpose(x, (0, 1, 4, 2, 5, 3))
    return x.reshape(n, h * 2, w * 2, c)


# ---------------------------------------------------------------------------
# PathSRGAN forward (shared between the Pallas and the reference conv).
# ---------------------------------------------------------------------------
def _dense_block(x, blk, conv, post_slope=None):
    """DenseBlock_fixed with residual/beta/activation fused into the convs."""
    c = blk["convs"]
    # m1t = x + L(conv1(x))
    m1t = conv(x, c[0]["w"], c[0]["b"], act="leaky", slope=0.01, res=x)
    s2 = x + m1t                                            # x + m1t
    # m2t = x + m1t + L(conv2(m1t))
    m2t = conv(m1t, c[1]["w"], c[1]["b"], act="leaky", slope=0.01, res=s2)
    s3 = s2 + m2t                                           # x + m1t + m2t
    # m3t = x + m1t + m2t + L(conv3(m2t))
    m3t = conv(m2t, c[2]["w"], c[2]["b"], act="leaky", slope=0.01, res=s3)
    # m4t = x + m1t + m2t + L(conv4(m3t))    (sic: skips m3t, matches DenseBlock_fixed)
    m4t = conv(m3t, c[3]["w"], c[3]["b"], act="leaky", slope=0.01, res=s3)
    # out = x + beta * last_conv(m4t); optional trailing scalar PReLU fused as post-act
    if post_slope is None:
        return conv(m4t, c[4]["w"], c[4]["b"], act="none",
                    res=x, res_scale=DENSE_BETA)
    return conv(m4t, c[4]["w"], c[4]["b"], act="leaky", slope=post_slope,
                act_pos="post", res=x, res_scale=DENSE_BETA)


def forward(x_nchw, P, conv):
    """PathSRGAN.forward(x, stage1=False) -> (out1, sigmoid(conv2)); NCHW in/out."""
    x = jnp.transpose(x_nchw, (0, 2, 3, 1)).astype(jnp.float32)   # NCHW -> NHWC

    def cv(h, cp, act="none", slope=0.0, **kw):
        return conv(h, cp["w"], cp["b"], act=act, slope=slope, **kw)

    def db(h, blk, post_slope=None):
        return _dense_block(h, blk, conv, post_slope)

    eye = cv(x, P["eye_conv"], "leaky", P["eye_prelu"])            # conv9 + PReLU
    s1_down1 = db(db(eye, P["down1"][0]), P["down1"][1])
    d1 = _avg_pool2(s1_down1)
    s1_down2 = db(db(cv(d1, P["down2_conv"]), P["down2_blocks"][0]), P["down2_blocks"][1])
    d2 = _avg_pool2(s1_down2)
    s1_down3 = db(db(cv(d2, P["down3_conv"]), P["down3_blocks"][0]), P["down3_blocks"][1])
    d3 = _avg_pool2(s1_down3)

    h = cv(d3, P["bottom"][0]["conv"], "leaky", P["bottom"][0]["prelu"])
    h = cv(h, P["bottom"][1]["conv"], "leaky", P["bottom"][1]["prelu"])
    s1_bottom = cv(h, P["bottom"][2]["conv"], "leaky", P["bottom"][2]["prelu"])

    def up_block(skip, below, up):
        hh = jnp.concatenate([skip, _upsample_nearest2(below)], axis=-1)
        hh = cv(hh, up["conv_in"], "leaky", up["prelu_in"])
        hh = db(db(hh, up["blocks"][0]), up["blocks"][1])
        return cv(hh, up["conv_out"], "leaky", up["prelu_out"])

    s1_up1 = up_block(s1_down3, s1_bottom, P["up1"])
    s1_up2 = up_block(s1_down2, s1_up1, P["up2"])
    s1_up3 = up_block(s1_down1, s1_up2, P["up3"])

    # UpsampleBLock: conv -> PixelShuffle -> PReLU.  The scalar PReLU commutes with
    # the PixelShuffle permutation, so it is fused into the conv epilogue.
    sr_up = _pixel_shuffle2(cv(s1_up3, P["ups1"]["conv"], "leaky", P["ups1"]["prelu"]))
    out1 = cv(sr_up, P["out1_conv"])                               # stage1_out (7x7)

    s2_down1 = db(sr_up, P["s2_down1"]["block"], post_slope=P["s2_down1"]["prelu"])
    h = cv(s2_down1, P["s2_down2"]["conv"], "leaky", P["s2_down2"]["prelu1"])
    s2_down2 = db(h, P["s2_down2"]["block"], post_slope=P["s2_down2"]["prelu2"])
    sr_up2 = _pixel_shuffle2(cv(s2_down2, P["ups2"]["conv"], "leaky", P["ups2"]["prelu"]))
    out2 = cv(sr_up2, P["out2_conv"], "sigmoid")                   # torch.sigmoid fused

    return (jnp.transpose(out1, (0, 3, 1, 2)),
            jnp.transpose(out2, (0, 3, 1, 2)))


# ---------------------------------------------------------------------------
# Parameter init (weights stored HWIO; scalar PReLU params = 0.25, PyTorch default).
# ---------------------------------------------------------------------------
def _conv_init(key, cin, cout, ksz):
    kw, kb = jax.random.split(key)
    bound = float((cin * ksz * ksz) ** -0.5)
    w = jax.random.uniform(kw, (ksz, ksz, cin, cout), jnp.float32, -bound, bound)
    b = jax.random.uniform(kb, (cout,), jnp.float32, -bound, bound)
    return {"w": w, "b": b}


def _dense_init(key, ch):
    return {"convs": [_conv_init(k, ch, ch, 3) for k in jax.random.split(key, 5)]}


def init_params(key, input_num=INPUT_NUM):
    keys = iter(jax.random.split(key, 64))
    nk = lambda: next(keys)
    P = {}
    P["eye_conv"] = _conv_init(nk(), input_num * 3, 64, 9)
    P["eye_prelu"] = 0.25
    P["down1"] = [_dense_init(nk(), 64) for _ in range(2)]
    P["down2_conv"] = _conv_init(nk(), 64, 128, 3)
    P["down2_blocks"] = [_dense_init(nk(), 128) for _ in range(2)]
    P["down3_conv"] = _conv_init(nk(), 128, 256, 3)
    P["down3_blocks"] = [_dense_init(nk(), 256) for _ in range(2)]
    P["bottom"] = [{"conv": _conv_init(nk(), 256, 512, 3), "prelu": 0.25},
                   {"conv": _conv_init(nk(), 512, 512, 3), "prelu": 0.25},
                   {"conv": _conv_init(nk(), 512, 256, 3), "prelu": 0.25}]

    def up(cin, cmid, cout):
        return {"conv_in": _conv_init(nk(), cin, cmid, 3), "prelu_in": 0.25,
                "blocks": [_dense_init(nk(), cmid) for _ in range(2)],
                "conv_out": _conv_init(nk(), cmid, cout, 3), "prelu_out": 0.25}

    P["up1"] = up(512, 256, 128)
    P["up2"] = up(256, 128, 64)
    P["up3"] = up(128, 64, 64)
    P["ups1"] = {"conv": _conv_init(nk(), 64, 64 * 4, 3), "prelu": 0.25}
    P["out1_conv"] = _conv_init(nk(), 64, 3, 7)
    P["s2_down1"] = {"block": _dense_init(nk(), 64), "prelu": 0.25}
    P["s2_down2"] = {"conv": _conv_init(nk(), 64, 128, 3), "prelu1": 0.25,
                     "block": _dense_init(nk(), 128), "prelu2": 0.25}
    P["ups2"] = {"conv": _conv_init(nk(), 128, 128 * 4, 3), "prelu": 0.25}
    P["out2_conv"] = _conv_init(nk(), 128, 3, 9)
    return P


if __name__ == "__main__":
    key = jax.random.PRNGKey(0)
    k_params, k_x = jax.random.split(key)
    params = init_params(k_params)

    x = jax.random.normal(k_x, (2, INPUT_NUM * 3, 16, 16), jnp.float32)   # NCHW

    out1, out2 = jax.block_until_ready(forward(x, params, conv2d_same_pallas))
    assert out1.shape == (2, 3, 32, 32), out1.shape
    assert out2.shape == (2, 3, 64, 64), out2.shape

    ref1, ref2 = jax.block_until_ready(forward(x, params, conv2d_same_reference))
    err = max(float(jnp.max(jnp.abs(out1 - ref1))),
              float(jnp.max(jnp.abs(out2 - ref2))))
    assert err < 2e-2, f"mismatch vs reference: {err}"

    print("KERNEL_OK")
</pallas_src>

<mosaic_0001>
module attributes {stable_mosaic.version = 11 : i64} {
  func.func @_conv_matmul_kernel(%arg0: i32, %arg1: i32, %arg2: i32, %arg3: memref<256x256xbf16, #tpu.memory_space<vmem>>, %arg4: memref<256x64xbf16, #tpu.memory_space<vmem>>, %arg5: memref<1x64xf32, #tpu.memory_space<vmem>>, %arg6: memref<256x64xf32, #tpu.memory_space<vmem>>) attributes {dimension_semantics = [#tpu.dimension_semantics<parallel>, #tpu.dimension_semantics<parallel>, #tpu.dimension_semantics<arbitrary>], iteration_bounds = array<i64: 2, 1, 1>, scalar_prefetch = 0 : i64, scratch_operands = 0 : i64, tpu.core_type = #tpu.core_type<tc>, window_params = [{transform_indices = @transform_0, window_bounds = array<i64: 256, 256>}, {transform_indices = @transform_1, window_bounds = array<i64: 256, 64>}, {transform_indices = @transform_2, window_bounds = array<i64: 1, 64>}, {transform_indices = @transform_3, window_bounds = array<i64: 256, 64>}]} {
    %c0 = arith.constant 0 : index
    %c0_0 = arith.constant 0 : index
    %0 = vector.load %arg3[%c0, %c0_0] : memref<256x256xbf16, #tpu.memory_space<vmem>>, vector<256x256xbf16>
    %c0_1 = arith.constant 0 : index
    %c0_2 = arith.constant 0 : index
    %1 = vector.load %arg4[%c0_1, %c0_2] : memref<256x64xbf16, #tpu.memory_space<vmem>>, vector<256x64xbf16>
    %cst = arith.constant dense<0.000000e+00> : vector<256x64xf32>
    %2 = tpu.matmul %0, %1, %cst {dimension_numbers = #tpu.dot_dimension_numbers<[1], [0], [0], [1], [0, 0, 1, 1], [], []>} : vector<256x256xbf16>, vector<256x64xbf16>, vector<256x64xf32> -> vector<256x64xf32>
    %c0_i32 = arith.constant 0 : i32
    %3 = arith.cmpi eq, %arg2, %c0_i32 : i32
    %4 = arith.extui %3 : i1 to i32
    %c0_i32_3 = arith.constant 0 : i32
    %5 = arith.cmpi ne, %4, %c0_i32_3 : i32
    scf.if %5 {
      %c0_8 = arith.constant 0 : index
      %c0_9 = arith.constant 0 : index
      %12 = vector.load %arg6[%c0_8, %c0_9] : memref<256x64xf32, #tpu.memory_space<vmem>>, vector<256x64xf32>
      tpu.vector_store %arg6[%c0_8, %c0_9], %2 {strides = array<i32>} : memref<256x64xf32, #tpu.memory_space<vmem>>, vector<256x64xf32>,
    } else {
    }
    %c0_i32_4 = arith.constant 0 : i32
    %6 = arith.cmpi sgt, %arg2, %c0_i32_4 : i32
    %7 = arith.extui %6 : i1 to i32
    %c0_i32_5 = arith.constant 0 : i32
    %8 = arith.cmpi ne, %7, %c0_i32_5 : i32
    scf.if %8 {
      %c0_8 = arith.constant 0 : index
      %c0_9 = arith.constant 0 : index
      %12 = vector.load %arg6[%c0_8, %c0_9] : memref<256x64xf32, #tpu.memory_space<vmem>>, vector<256x64xf32>
      %13 = arith.addf %12, %2 : vector<256x64xf32>
      %c0_10 = arith.constant 0 : index
      %c0_11 = arith.constant 0 : index
      %14 = vector.load %arg6[%c0_10, %c0_11] : memref<256x64xf32, #tpu.memory_space<vmem>>, vector<256x64xf32>
      tpu.vector_store %arg6[%c0_10, %c0_11], %13 {strides = array<i32>} : memref<256x64xf32, #tpu.memory_space<vmem>>, vector<256x64xf32>,
    } else {
    }
    %c0_i32_6 = arith.constant 0 : i32
    %9 = arith.cmpi eq, %arg2, %c0_i32_6 : i32
    %10 = arith.extui %9 : i1 to i32
    %c0_i32_7 = arith.constant 0 : i32
    %11 = arith.cmpi ne, %10, %c0_i32_7 : i32
    scf.if %11 {
      %c0_8 = arith.constant 0 : index
      %c0_9 = arith.constant 0 : index
      %12 = vector.load %arg6[%c0_8, %c0_9] : memref<256x64xf32, #tpu.memory_space<vmem>>, vector<256x64xf32>
      %c0_10 = arith.constant 0 : index
      %c0_11 = arith.constant 0 : index
      %13 = vector.load %arg5[%c0_10, %c0_11] : memref<1x64xf32, #tpu.memory_space<vmem>>, vector<1x64xf32>
      %14 = vector.broadcast %13 : vector<1x64xf32> to vector<256x64xf32>
      %15 = arith.addf %12, %14 : vector<256x64xf32>
      %cst_12 = arith.constant 0.000000e+00 : f32
      %16 = vector.broadcast %cst_12 : f32 to vector<256x64xf32>
      %17 = arith.cmpf ogt, %15, %16 : vector<256x64xf32>
      %cst_13 = arith.constant 2.500000e-01 : f32
      %18 = vector.broadcast %cst_13 : f32 to vector<256x64xf32>
      %19 = arith.mulf %18, %15 : vector<256x64xf32>
      %20 = arith.select %17, %15, %19 : vector<256x64xi1>, vector<256x64xf32>
      %c0_14 = arith.constant 0 : index
      %c0_15 = arith.constant 0 : index
      %21 = vector.load %arg6[%c0_14, %c0_15] : memref<256x64xf32, #tpu.memory_space<vmem>>, vector<256x64xf32>
      tpu.vector_store %arg6[%c0_14, %c0_15], %20 {strides = array<i32>} : memref<256x64xf32, #tpu.memory_space<vmem>>, vector<256x64xf32>,
    } else {
    }
    return
  }
  func.func @transform_0(%arg0: i32, %arg1: i32, %arg2: i32) -> (i32, i32) {
    %c0_i32 = arith.constant 0 : i32
    return %arg0, %arg2 : i32, i32
  }
  func.func @transform_1(%arg0: i32, %arg1: i32, %arg2: i32) -> (i32, i32) {
    %c0_i32 = arith.constant 0 : i32
    return %arg2, %arg1 : i32, i32
  }
  func.func @transform_2(%arg0: i32, %arg1: i32, %arg2: i32) -> (i32, i32) {
    %c0_i32 = arith.constant 0 : i32
    %c0_i32_0 = arith.constant 0 : i32
    return %c0_i32, %arg1 : i32, i32
  }
  func.func @transform_3(%arg0: i32, %arg1: i32, %arg2: i32) -> (i32, i32) {
    %c0_i32 = arith.constant 0 : i32
    return %arg0, %arg1 : i32, i32
  }
}

</mosaic_0001>

<bundles_post_ra>
// kernel: conv2d_same_pallas.1
= control target key start
LH: loop header
LB: loop body
LE: loop exit
PB: predicated region body
PF: predicated region fallthrough
CT: control target
= control target key end

     0   :  { %8 = vsyncpa [#allocation3], 0  ;;  %s2024_s0 = inlined_call_operand.vmem [shape: bf16[512,256], index: 0, kind: input, shape index: {}]   ;;  %s2025_s1 = inlined_call_operand.vmem [shape: bf16[256,64], index: 1, kind: input, shape index: {}]   ;;  %s2026_s2 = inlined_call_operand.vmem [shape: f32[1,64], index: 2, kind: input, shape index: {}]   ;;  %s2027_s3 = inlined_call_operand.hbm [shape: f32[512,64], index: 3, kind: output, shape index: {}]  }
   0x1   :  { %10 = vsyncpa [#allocation3 + $0x1], 0  ;;  %s1625_s12 = smov 0   ;;  %s1627_s13 = smov 0  }
   0x2   :  { %s1629_s14 = smov 0   ;;  %s1631_s15 = smov 0  }
   0x3   :  { %s1633_s16 = smov 0   ;;  %s1635_s17 = smov 0  }
   0x4 LB: > { %s1208_s18 = sadd.s32 4294967295, %s1600_s17   ;;  %s1209_s19 = sadd.s32 4294967294, %s1600_s17   ;;  %s1600_s17 = sphi %s1635_s17, %s16_s17   ;;  %s1596_s16 = sphi %s1633_s16, %s2034_s16   ;;  %s1592_s15 = sphi %s1631_s15, %s2033_s15   ;;  %s1588_s14 = sphi %s1629_s14, %s2032_s14   ;;  %s1584_s13 = sphi %s1627_s13, %s2031_s13   ;;  %s1580_s12 = sphi %s1625_s12, %s2030_s12  }
   0x5   : > { %s35_s20 = sadd.s32 1, %s1596_s16  ;;  %s126_s21 = sadd.s32 1, %s1588_s14 }
   0x6   : > { %p37_p0 = scmp.ge.s32.totalorder %s35_s20, 2  ;;  %p136_p1 = scmp.ne.s32.totalorder %s1588_s14, %s1584_s13 }
   0x7   : > { %p137_p2 = scmp.eq.s32.totalorder %s1208_s18, 1  ;;  %p142_p3 = scmp.ne.s32.totalorder %s1584_s13, %s1580_s12 }
   0x8   : > { %s2036_s20 = smov (%p37_p0, %s35_s20), 0  ;;  %p143_p5 = scmp.eq.s32.totalorder %s1209_s19, 1 }
   0x9   : > { %p1665_p4 = por %p137_p2, %p136_p1  ;;  %s121_s23 = ssub.s32 %s1596_s16, %s2036_s20 }
   0xa   : > { %p1214_p6 = scmp.ge.s32.totalorder %s1600_s17, 1  ;;  %p124_p7 = scmp.eq.s32.totalorder %s121_s23, 0 }
   0xb   : > { %p1672_p8 = por %p143_p5, %p142_p3  ;;  %p194_p9 = scmp.lt.s32.totalorder %s1600_s17, 3 }
   0xc   : > { %s1678_s25 = scalar_select %p124_p7, %s1588_s14, %s126_s21  }
   0xd   : > { %p195_p10 = pnand %p1214_p6, %p194_p9 }
   0xe   : > { %s1216_s28 = sshll.u32 (!%p195_p10), %s1592_s15, 5  ;;  %s231_s30 = sand.u32 (!%p195_p10), 1, %s1584_s13  }
   0xf   : > { %198 = sbr.rel (%p195_p10) target bundleno = 338 (0x152), region = 32  ;;  %p236_p11 = scmp.lt.s32.totalorder (!%p195_p10), %s1216_s28, 63 }
  0x10   : > { %s1215_s4 = sshll.u32 (!%p195_p10), %s231_s30, 8  ;;  %s1602_s19 = smov (!%p195_p10), [#allocation2]  }
  0x11   : > { %s1769_s6 = scalar_lea.vmem (!%p195_p10), [#allocation2], %s1215_s4  ;;  %s1528_s21 = sshll.u32 (!%p195_p10), %s1602_s19, 4  ;;  %s1529_s21 = int_to_ptr.vmem [resolvable:$false] %s1528_s21 }
  0x12   : > { %s1097_s8 = sshll.u32 (!%p195_p10), %s1769_s6, 4  ;;  %s1530_s23 = scalar_lea.vmem (!%p195_p10), %s1529_s21, 8192  ;;  %s1971_s8 = int_to_ptr.vmem [resolvable:$true] %s1097_s8 }
  0x13   : > { %s1524_s18 = scalar_lea.vmem (!%p195_p10), %s1971_s8, 4096  ;;  %p1531_p1 = scmp.lt.s32.totalorder (!%p195_p10), %s1971_s8, %s1529_s21 }
  0x14   : > { %v1460_v0 = vld [vmem:[%s2025_s1 + $0x78] sm:$0xff]   ;;  %v1462_v2 = vld [vmem:[%s2025_s1 + $0x70] sm:$0xff]   ;;  %v1464_v4 = vld [vmem:[%s2025_s1 + $0x68] sm:$0xff]   ;;  %s2038_s28 = smov (!%p236_p11, %s1216_s28), 63  ;;  %vm745_vm0 = vcmask 523264   ;;  %p1525_p12 = scmp.ne.s32.totalorder %s1971_s8, %s1524_s18 }
  0x15   : > { %v1461_v1 = vld [vmem:[%s2025_s1 + $0x38] sm:$0xff]   ;;  %1275 = vmatprep.subr.bf16.mxu0 %v1460_v0  ;;  %1387 = vmatprep.subr.bf16.mxu1 %v1460_v0  ;;  %v1463_v3 = vld [vmem:[%s2025_s1 + $0x30] sm:$0xff]   ;;  %v1465_v5 = vld [vmem:[%s2025_s1 + $0x28] sm:$0xff]   ;;  %s1273_s26 = sshll.u32 %s2038_s28, 3  ;;  %s1274_s28 = sshll.u32 %s1592_s15, 12 }
  0x16   : > { %1276 = vmatpush3.bf16.msra.mxu0 %v1461_v1  ;;  %1395 = vmatpush3.bf16.msra.mxu1 %v1461_v1  ;;  %v1466_v6 = vld [vmem:[%s2025_s1 + $0x60] sm:$0xff]   ;;  %v1468_v8 = vld [vmem:[%s2025_s1 + $0x58] sm:$0xff]   ;;  %s1711_s5 = scalar_lea.vmem %s2024_s0, %s1273_s26  ;;  %v1470_v10 = vld [vmem:[%s2025_s1 + $0x50] sm:$0xff]   ;;  %s1969_s11 = scalar_lea.hbm %s2027_s3, %s1274_s28 }
  0x17   : > { %1277 = vmatprep.subr.bf16.mxu0 %v1462_v2  ;;  %1388 = vmatprep.subr.bf16.mxu1 %v1462_v2  ;;  %v1467_v7 = vld [vmem:[%s2025_s1 + $0x20] sm:$0xff]   ;;  %v1469_v9 = vld [vmem:[%s2025_s1 + $0x18] sm:$0xff]   ;;  %v1471_v13 = vld [vmem:[%s2025_s1 + $0x10] sm:$0xff]   ;;  %s1979_s15 = scalar_lea.sflag [#allocation3], %s231_s30  ;;  %p1526_p13 = pnand %p1525_p12, %p1665_p4 }
  0x18   : > { %v1478_v11 = vld [vmem:[%s1711_s5 + $0x4] ss:$8 sps:$4 sm:$0xff]   ;;  %v1476_v18 = vld [vmem:[%s1711_s5] ss:$8 sps:$4 sm:$0xff]   ;;  %v1482_v20 = vld [vmem:[%s1711_s5 + $0x14] ss:$8 sps:$4 sm:$0xff]   ;;  %p1532_p2 = scmp.lt.s32.totalorder %s1530_s23, %s1524_s18 }
  0x19   : > { %v1481_v12 = vld [vmem:[%s1711_s5 + $0x84] ss:$8 sps:$4 sm:$0xff]   ;;  %612 = vmatprep.mubr.bf16.mxu0 %v1478_v11  ;;  %v1479_v19 = vld [vmem:[%s1711_s5 + $0x80] ss:$8 sps:$4 sm:$0xff]   ;;  %v1484_v21 = vld [vmem:[%s1711_s5 + $0x94] ss:$8 sps:$4 sm:$0xff]   ;;  %p1527_p0 = pneg %p1526_p13 }
  0x1a   : > { %1278 = vmatpush3.bf16.msra.mxu0 %v1463_v3  ;;  %1396 = vmatpush3.bf16.msra.mxu1 %v1463_v3  ;;  %v1472_v14 = vld [vmem:[%s2025_s1 + $0x48] sm:$0xff]   ;;  %v1474_v16 = vld [vmem:[%s2025_s1 + $0x40] sm:$0xff]   ;;  %v1486_v22 = vld [vmem:[%s1711_s5 + $0x10] ss:$8 sps:$4 sm:$0xff]   ;;  %p1533_p3 = por %p1532_p2, %p1531_p1 }
  0x1b   : > { %1279 = vmatprep.subr.bf16.mxu0 %v1464_v4  ;;  %1389 = vmatprep.subr.bf16.mxu1 %v1464_v4  ;;  %v1473_v15 = vld [vmem:[%s2025_s1 + $0x8] sm:$0xff]   ;;  %v1475_v17 = vld [vmem:[%s2025_s1] sm:$0xff]   ;;  %v1487_v23 = vld [vmem:[%s1711_s5 + $0x90] ss:$8 sps:$4 sm:$0xff]  }
  0x1c   : > { %676 = vmatprep.mubr.bf16.mxu1 %v1481_v12  ;;  %v1488_v24 = vld [vmem:[%s1711_s5 + $0x24] ss:$8 sps:$4 sm:$0xff]   ;;  %v1492_v26 = vld [vmem:[%s1711_s5 + $0x20] ss:$8 sps:$4 sm:$0xff]   ;;  %v1494_v28 = vld [vmem:[%s1711_s5 + $0x34] ss:$8 sps:$4 sm:$0xff]   ;;  %p1534_p5 = pnand %p1533_p3, %p1527_p0 }
  0x1d   : > { %v1490_v25 = vld [vmem:[%s1711_s5 + $0xa4] ss:$8 sps:$4 sm:$0xff]   ;;  %v1493_v27 = vld [vmem:[%s1711_s5 + $0xa0] ss:$8 sps:$4 sm:$0xff]   ;;  %v1496_v29 = vld [vmem:[%s1711_s5 + $0xb4] ss:$8 sps:$4 sm:$0xff]  }
  0x1e   : > { %1280 = vmatpush3.bf16.msra.mxu0 %v1465_v5  ;;  %1397 = vmatpush3.bf16.msra.mxu1 %v1465_v5  ;;  %v1498_v30 = vld [vmem:[%s1711_s5 + $0x30] ss:$8 sps:$4 sm:$0xff]   ;;  %v1500_v32 = vld [vmem:[%s1711_s5 + $0x44] ss:$8 sps:$4 sm:$0xff]   ;;  %v1504_v34 = vld [vmem:[%s1711_s5 + $0x40] ss:$8 sps:$4 sm:$0xff]  }
  0x1f   : > { %1281 = vmatprep.subr.bf16.mxu0 %v1466_v6  ;;  %1390 = vmatprep.subr.bf16.mxu1 %v1466_v6  ;;  %v1499_v31 = vld [vmem:[%s1711_s5 + $0xb0] ss:$8 sps:$4 sm:$0xff]   ;;  %v1502_v33 = vld [vmem:[%s1711_s5 + $0xc4] ss:$8 sps:$4 sm:$0xff]   ;;  %v1505_v35 = vld [vmem:[%s1711_s5 + $0xc0] ss:$8 sps:$4 sm:$0xff]  }
  0x20   : > { %v1506_v36 = vld [vmem:[%s1711_s5 + $0x54] ss:$8 sps:$4 sm:$0xff]   ;;  %v1510_v38 = vld [vmem:[%s1711_s5 + $0x50] ss:$8 sps:$4 sm:$0xff]   ;;  %v1512_v40 = vld [vmem:[%s1711_s5 + $0x64] ss:$8 sps:$4 sm:$0xff]  }
  0x21   : > { %v1508_v37 = vld [vmem:[%s1711_s5 + $0xd4] ss:$8 sps:$4 sm:$0xff]   ;;  %v1511_v39 = vld [vmem:[%s1711_s5 + $0xd0] ss:$8 sps:$4 sm:$0xff]   ;;  %v1514_v41 = vld [vmem:[%s1711_s5 + $0xe4] ss:$8 sps:$4 sm:$0xff]  }
  0x22   : > { %1282 = vmatpush3.bf16.msra.mxu0 %v1467_v7  ;;  %1398 = vmatpush3.bf16.msra.mxu1 %v1467_v7  ;;  %v1516_v42 = vld [vmem:[%s1711_s5 + $0x60] ss:$8 sps:$4 sm:$0xff]   ;;  %v1518_v44 = vld [vmem:[%s1711_s5 + $0x74] ss:$8 sps:$4 sm:$0xff]   ;;  %v1522_v46 = vld [vmem:[%s1711_s5 + $0x70] ss:$8 sps:$4 sm:$0xff]  }
  0x23   : > { %1283 = vmatprep.subr.bf16.mxu0 %v1468_v8  ;;  %1391 = vmatprep.subr.bf16.mxu1 %v1468_v8  ;;  %v1517_v43 = vld [vmem:[%s1711_s5 + $0xe0] ss:$8 sps:$4 sm:$0xff]   ;;  %v1520_v45 = vld [vmem:[%s1711_s5 + $0xf4] ss:$8 sps:$4 sm:$0xff]   ;;  %v1523_v47 = vld [vmem:[%s1711_s5 + $0xf0] ss:$8 sps:$4 sm:$0xff]  }
  0x24   : > { %v1782_v62 = vld [vmem:[%s2026_s2] ss:$0 sm:$0xff] }
  0x26   : > { %1284 = vmatpush3.bf16.msra.mxu0 %v1469_v9  ;;  %1399 = vmatpush3.bf16.msra.mxu1 %v1469_v9 }
  0x27   : > { %1285 = vmatprep.subr.bf16.mxu0 %v1470_v10  ;;  %1392 = vmatprep.subr.bf16.mxu1 %v1470_v10 }
  0x2a   : > { %1286 = vmatpush3.bf16.msra.mxu0 %v1471_v13  ;;  %1400 = vmatpush3.bf16.msra.mxu1 %v1471_v13 }
  0x2b   : > { %1287 = vmatprep.subr.bf16.mxu0 %v1472_v14  ;;  %1393 = vmatprep.subr.bf16.mxu1 %v1472_v14 }
  0x2e   : > { %1288 = vmatpush3.bf16.msra.mxu0 %v1473_v15  ;;  %1401 = vmatpush3.bf16.msra.mxu1 %v1473_v15 }
  0x2f   : > { %1289 = vmatprep.subr.bf16.mxu0 %v1474_v16  ;;  %1394 = vmatprep.subr.bf16.mxu1 %v1474_v16 }
  0x32   : > { %1290 = vmatpush3.bf16.msra.mxu0 %v1475_v17  ;;  %1402 = vmatpush3.bf16.msra.mxu1 %v1475_v17 }
  0x35   : > { %613 = vmatmul.mubr.bf16.vlgmr.msra.gmra.mxu0 %v1476_v18  ;;  %677 = vmatmul.mubr.bf16.vlgmr.msra.gmra.mxu1 %v1479_v19 }
  0x36   : > { %620 = vmatprep.mubr.bf16.mxu0 %v1482_v20  ;;  %684 = vmatprep.mubr.bf16.mxu1 %v1484_v21 }
  0x3d   : > { %621 = vmatmul.mubr.bf16.gmra.mxu0 %v1486_v22  ;;  %685 = vmatmul.mubr.bf16.gmra.mxu1 %v1487_v23 }
  0x3e   : > { %628 = vmatprep.mubr.bf16.mxu0 %v1488_v24  ;;  %692 = vmatprep.mubr.bf16.mxu1 %v1490_v25 }
  0x45   : > { %629 = vmatmul.mubr.bf16.gmra.mxu0 %v1492_v26  ;;  %693 = vmatmul.mubr.bf16.gmra.mxu1 %v1493_v27 }
  0x46   : > { %636 = vmatprep.mubr.bf16.mxu0 %v1494_v28  ;;  %700 = vmatprep.mubr.bf16.mxu1 %v1496_v29 }
  0x4d   : > { %637 = vmatmul.mubr.bf16.gmra.mxu0 %v1498_v30  ;;  %701 = vmatmul.mubr.bf16.gmra.mxu1 %v1499_v31 }
  0x4e   : > { %644 = vmatprep.mubr.bf16.mxu0 %v1500_v32  ;;  %708 = vmatprep.mubr.bf16.mxu1 %v1502_v33 }
  0x55   : > { %645 = vmatmul.mubr.bf16.gmra.mxu0 %v1504_v34  ;;  %709 = vmatmul.mubr.bf16.gmra.mxu1 %v1505_v35 }
  0x56   : > { %652 = vmatprep.mubr.bf16.mxu0 %v1506_v36  ;;  %716 = vmatprep.mubr.bf16.mxu1 %v1508_v37 }
  0x5d   : > { %653 = vmatmul.mubr.bf16.gmra.mxu0 %v1510_v38  ;;  %717 = vmatmul.mubr.bf16.gmra.mxu1 %v1511_v39 }
  0x5e   : > { %660 = vmatprep.mubr.bf16.mxu0 %v1512_v40  ;;  %724 = vmatprep.mubr.bf16.mxu1 %v1514_v41 }
  0x65   : > { %661 = vmatmul.mubr.bf16.gmra.mxu0 %v1516_v42  ;;  %725 = vmatmul.mubr.bf16.gmra.mxu1 %v1517_v43 }
  0x66   : > { %668 = vmatprep.mubr.bf16.mxu0 %v1518_v44  ;;  %732 = vmatprep.mubr.bf16.mxu1 %v1520_v45 }
  0x6d   : > { %669 = vmatmul.mubr.bf16.gmra.mxu0 %v1522_v46  ;;  %733 = vmatmul.mubr.bf16.gmra.mxu1 %v1523_v47 }
  0xf5   : > { %v1291_v48 = vpop.f32.mrf.mxu0  ;;  %v1339_v49 = vpop.f32.mrf.mxu1 }
  0xf7   : > { %v1292_v50 = vpop.f32.mrf.mxu0  ;;  %v1340_v51 = vpop.f32.mrf.mxu1 }
  0xf8   : > { %v1293_v52 = vadd.f32 %v1292_v50, %v1291_v48  ;;  %v1341_v53 = vadd.f32 %v1340_v51, %v1339_v49 }
  0xf9   : > { %v1294_v54 = vpop.f32.mrf.mxu0  ;;  %v1342_v55 = vpop.f32.mrf.mxu1 }
  0xfa   : > { %746 = vst.msk [vmem:[%s1769_s6] sm:$0xff] %vm745_vm0, %v1293_v52  ;;  %762 = vst.msk [vmem:[%s1769_s6 + $0x80] sm:$0xff] %vm745_vm0, %v1341_v53 }
  0xfb   : > { %v1295_v56 = vpop.f32.mrf.mxu0  ;;  %v1343_v57 = vpop.f32.mrf.mxu1 }
  0xfc   : > { %v1296_v58 = vadd.f32 %v1295_v56, %v1294_v54  ;;  %v1344_v59 = vadd.f32 %v1343_v57, %v1342_v55 }
  0xfd   : > { %v1297_v60 = vpop.f32.mrf.mxu0  ;;  %v1345_v61 = vpop.f32.mrf.mxu1 }
  0xfe   : > { %747 = vst.msk [vmem:[%s1769_s6 + $0x8] sm:$0xff] %vm745_vm0, %v1296_v58  ;;  %763 = vst.msk [vmem:[%s1769_s6 + $0x88] sm:$0xff] %vm745_vm0, %v1344_v59 }
  0xff   : > { %v1298_v63 = vpop.f32.mrf.mxu0  ;;  %v1346_v0 = vpop.f32.mrf.mxu1 }
 0x100   : > { %v1299_v1 = vadd.f32 %v1298_v63, %v1297_v60  ;;  %v1347_v2 = vadd.f32 %v1346_v0, %v1345_v61 }
 0x101   : > { %v882_v3 = vld [vmem:[%s1769_s6] sm:$0xff]  ;;  %v1300_v5 = vpop.f32.mrf.mxu0  ;;  %v1348_v6 = vpop.f32.mrf.mxu1 }
 0x102   : > { %v898_v4 = vld [vmem:[%s1769_s6 + $0x80] sm:$0xff]  ;;  %v921_v7 = vadd.f32 %v1782_v62, %v882_v3  ;;  %748 = vst.msk [vmem:[%s1769_s6 + $0x10] sm:$0xff] %vm745_vm0, %v1299_v1  ;;  %764 = vst.msk [vmem:[%s1769_s6 + $0x90] sm:$0xff] %vm745_vm0, %v1347_v2 }
 0x103   : > { %v937_v8 = vadd.f32 %v1782_v62, %v898_v4  ;;  %v1301_v9 = vpop.f32.mrf.mxu0  ;;  %v1349_v10 = vpop.f32.mrf.mxu1 }
 0x104   : > { %vm953_vm1 = vcmp.gt.f32.partialorder %v921_v7, 0.0  ;;  %v985_v11 = vmul.f32 0.25, %v921_v7  ;;  %v1302_v15 = vadd.f32 %v1301_v9, %v1300_v5  ;;  %v1350_v16 = vadd.f32 %v1349_v10, %v1348_v6 }
 0x105   : > { %vm969_vm2 = vcmp.gt.f32.partialorder %v937_v8, 0.0  ;;  %v1001_v12 = vmul.f32 0.25, %v937_v8  ;;  %v883_v13 = vld [vmem:[%s1769_s6 + $0x8] sm:$0xff]  ;;  %v1303_v17 = vpop.f32.mrf.mxu0  ;;  %v1351_v18 = vpop.f32.mrf.mxu1 }
 0x106   : > { %v899_v14 = vld [vmem:[%s1769_s6 + $0x88] sm:$0xff]  ;;  %v1017_v19 = vsel %vm953_vm1, %v921_v7, %v985_v11  ;;  %v922_v21 = vadd.f32 %v1782_v62, %v883_v13  ;;  %749 = vst.msk [vmem:[%s1769_s6 + $0x18] sm:$0xff] %vm745_vm0, %v1302_v15  ;;  %765 = vst.msk [vmem:[%s1769_s6 + $0x98] sm:$0xff] %vm745_vm0, %v1350_v16 }
 0x107   : > { %v1033_v20 = vsel %vm969_vm2, %v937_v8, %v1001_v12  ;;  %v938_v22 = vadd.f32 %v1782_v62, %v899_v14  ;;  %1050 = vst.msk [vmem:[%s1769_s6] sm:$0xff] %vm745_vm0, %v1017_v19  ;;  %v1304_v23 = vpop.f32.mrf.mxu0  ;;  %v1352_v24 = vpop.f32.mrf.mxu1 }
 0x108   : > { %1066 = vst.msk [vmem:[%s1769_s6 + $0x80] sm:$0xff] %vm745_vm0, %v1033_v20  ;;  %vm954_vm3 = vcmp.gt.f32.partialorder %v922_v21, 0.0  ;;  %v986_v25 = vmul.f32 0.25, %v922_v21  ;;  %v1305_v29 = vadd.f32 %v1304_v23, %v1303_v17  ;;  %v1353_v30 = vadd.f32 %v1352_v24, %v1351_v18 }
 0x109   : > { %vm970_vm4 = vcmp.gt.f32.partialorder %v938_v22, 0.0  ;;  %v1002_v26 = vmul.f32 0.25, %v938_v22  ;;  %v884_v27 = vld [vmem:[%s1769_s6 + $0x10] sm:$0xff]  ;;  %v1306_v31 = vpop.f32.mrf.mxu0  ;;  %v1354_v32 = vpop.f32.mrf.mxu1 }
 0x10a   : > { %v900_v28 = vld [vmem:[%s1769_s6 + $0x90] sm:$0xff]  ;;  %v1018_v33 = vsel %vm954_vm3, %v922_v21, %v986_v25  ;;  %v923_v35 = vadd.f32 %v1782_v62, %v884_v27  ;;  %750 = vst.msk [vmem:[%s1769_s6 + $0x20] sm:$0xff] %vm745_vm0, %v1305_v29  ;;  %766 = vst.msk [vmem:[%s1769_s6 + $0xa0] sm:$0xff] %vm745_vm0, %v1353_v30 }
 0x10b   : > { %v1034_v34 = vsel %vm970_vm4, %v938_v22, %v1002_v26  ;;  %v939_v36 = vadd.f32 %v1782_v62, %v900_v28  ;;  %1051 = vst.msk [vmem:[%s1769_s6 + $0x8] sm:$0xff] %vm745_vm0, %v1018_v33  ;;  %v1307_v37 = vpop.f32.mrf.mxu0  ;;  %v1355_v38 = vpop.f32.mrf.mxu1 }
 0x10c   : > { %1067 = vst.msk [vmem:[%s1769_s6 + $0x88] sm:$0xff] %vm745_vm0, %v1034_v34  ;;  %vm955_vm5 = vcmp.gt.f32.partialorder %v923_v35, 0.0  ;;  %v987_v39 = vmul.f32 0.25, %v923_v35  ;;  %v1308_v41 = vadd.f32 %v1307_v37, %v1306_v31  ;;  %v1356_v42 = vadd.f32 %v1355_v38, %v1354_v32 }
 0x10d   : > { %vm971_vm6 = vcmp.gt.f32.partialorder %v939_v36, 0.0  ;;  %v1003_v40 = vmul.f32 0.25, %v939_v36  ;;  %v1309_v43 = vpop.f32.mrf.mxu0  ;;  %v1357_v44 = vpop.f32.mrf.mxu1  ;;  %v885_v47 = vld [vmem:[%s1769_s6 + $0x18] sm:$0xff] }
 0x10e   : > { %v1019_v45 = vsel %vm955_vm5, %v923_v35, %v987_v39  ;;  %v901_v48 = vld [vmem:[%s1769_s6 + $0x98] sm:$0xff]  ;;  %v924_v49 = vadd.f32 %v1782_v62, %v885_v47  ;;  %751 = vst.msk [vmem:[%s1769_s6 + $0x28] sm:$0xff] %vm745_vm0, %v1308_v41  ;;  %767 = vst.msk [vmem:[%s1769_s6 + $0xa8] sm:$0xff] %vm745_vm0, %v1356_v42 }
 0x10f   : > { %v1035_v46 = vsel %vm971_vm6, %v939_v36, %v1003_v40  ;;  %1052 = vst.msk [vmem:[%s1769_s6 + $0x10] sm:$0xff] %vm745_vm0, %v1019_v45  ;;  %v940_v50 = vadd.f32 %v1782_v62, %v901_v48  ;;  %v1310_v51 = vpop.f32.mrf.mxu0  ;;  %v1358_v52 = vpop.f32.mrf.mxu1 }
 0x110   : > { %1068 = vst.msk [vmem:[%s1769_s6 + $0x90] sm:$0xff] %vm745_vm0, %v1035_v46  ;;  %v1311_v53 = vadd.f32 %v1310_v51, %v1309_v43  ;;  %v1359_v54 = vadd.f32 %v1358_v52, %v1357_v44  ;;  %vm956_vm7 = vcmp.gt.f32.partialorder %v924_v49, 0.0  ;;  %v988_v55 = vmul.f32 0.25, %v924_v49 }
 0x111   : > { %vm972_vm8 = vcmp.gt.f32.partialorder %v940_v50, 0.0  ;;  %v1004_v56 = vmul.f32 0.25, %v940_v50  ;;  %v1312_v57 = vpop.f32.mrf.mxu0  ;;  %v1360_v58 = vpop.f32.mrf.mxu1  ;;  %v886_v59 = vld [vmem:[%s1769_s6 + $0x20] sm:$0xff] }
 0x112   : > { %v902_v60 = vld [vmem:[%s1769_s6 + $0xa0] sm:$0xff]  ;;  %752 = vst.msk [vmem:[%s1769_s6 + $0x30] sm:$0xff] %vm745_vm0, %v1311_v53  ;;  %768 = vst.msk [vmem:[%s1769_s6 + $0xb0] sm:$0xff] %vm745_vm0, %v1359_v54  ;;  %v1020_v61 = vsel %vm956_vm7, %v924_v49, %v988_v55  ;;  %v925_v0 = vadd.f32 %v1782_v62, %v886_v59 }
 0x113   : > { %v1036_v63 = vsel %vm972_vm8, %v940_v50, %v1004_v56  ;;  %v941_v1 = vadd.f32 %v1782_v62, %v902_v60  ;;  %v1313_v2 = vpop.f32.mrf.mxu0  ;;  %v1361_v3 = vpop.f32.mrf.mxu1  ;;  %1053 = vst.msk [vmem:[%s1769_s6 + $0x18] sm:$0xff] %vm745_vm0, %v1020_v61 }
 0x114   : > { %1069 = vst.msk [vmem:[%s1769_s6 + $0x98] sm:$0xff] %vm745_vm0, %v1036_v63  ;;  %v1314_v4 = vadd.f32 %v1313_v2, %v1312_v57  ;;  %v1362_v5 = vadd.f32 %v1361_v3, %v1360_v58  ;;  %vm957_vm9 = vcmp.gt.f32.partialorder %v925_v0, 0.0  ;;  %v989_v6 = vmul.f32 0.25, %v925_v0 }
 0x115   : > { %vm973_vm10 = vcmp.gt.f32.partialorder %v941_v1, 0.0  ;;  %v1005_v7 = vmul.f32 0.25, %v941_v1  ;;  %v1315_v8 = vpop.f32.mrf.mxu0  ;;  %v1363_v9 = vpop.f32.mrf.mxu1  ;;  %v887_v10 = vld [vmem:[%s1769_s6 + $0x28] sm:$0xff] }
 0x116   : > { %v903_v11 = vld [vmem:[%s1769_s6 + $0xa8] sm:$0xff]  ;;  %753 = vst.msk [vmem:[%s1769_s6 + $0x38] sm:$0xff] %vm745_vm0, %v1314_v4  ;;  %769 = vst.msk [vmem:[%s1769_s6 + $0xb8] sm:$0xff] %vm745_vm0, %v1362_v5  ;;  %v1021_v12 = vsel %vm957_vm9, %v925_v0, %v989_v6  ;;  %v926_v14 = vadd.f32 %v1782_v62, %v887_v10 }
 0x117   : > { %v1037_v13 = vsel %vm973_vm10, %v941_v1, %v1005_v7  ;;  %v942_v15 = vadd.f32 %v1782_v62, %v903_v11  ;;  %v1316_v16 = vpop.f32.mrf.mxu0  ;;  %v1364_v17 = vpop.f32.mrf.mxu1  ;;  %1054 = vst.msk [vmem:[%s1769_s6 + $0x20] sm:$0xff] %vm745_vm0, %v1021_v12 }
 0x118   : > { %1070 = vst.msk [vmem:[%s1769_s6 + $0xa0] sm:$0xff] %vm745_vm0, %v1037_v13  ;;  %v1317_v18 = vadd.f32 %v1316_v16, %v1315_v8  ;;  %v1365_v19 = vadd.f32 %v1364_v17, %v1363_v9  ;;  %vm958_vm11 = vcmp.gt.f32.partialorder %v926_v14, 0.0  ;;  %v990_v20 = vmul.f32 0.25, %v926_v14 }
 0x119   : > { %vm974_vm12 = vcmp.gt.f32.partialorder %v942_v15, 0.0  ;;  %v1006_v21 = vmul.f32 0.25, %v942_v15  ;;  %v888_v22 = vld [vmem:[%s1769_s6 + $0x30] sm:$0xff]  ;;  %v1318_v24 = vpop.f32.mrf.mxu0  ;;  %v1366_v25 = vpop.f32.mrf.mxu1 }
 0x11a   : > { %v904_v23 = vld [vmem:[%s1769_s6 + $0xb0] sm:$0xff]  ;;  %v927_v26 = vadd.f32 %v1782_v62, %v888_v22  ;;  %754 = vst.msk [vmem:[%s1769_s6 + $0x40] sm:$0xff] %vm745_vm0, %v1317_v18  ;;  %770 = vst.msk [vmem:[%s1769_s6 + $0xc0] sm:$0xff] %vm745_vm0, %v1365_v19  ;;  %v1022_v28 = vsel %vm958_vm11, %v926_v14, %v990_v20 }
 0x11b   : > { %v943_v27 = vadd.f32 %v1782_v62, %v904_v23  ;;  %v1038_v29 = vsel %vm974_vm12, %v942_v15, %v1006_v21  ;;  %v1319_v30 = vpop.f32.mrf.mxu0  ;;  %v1367_v31 = vpop.f32.mrf.mxu1  ;;  %1055 = vst.msk [vmem:[%s1769_s6 + $0x28] sm:$0xff] %vm745_vm0, %v1022_v28 }
 0x11c   : > { %1071 = vst.msk [vmem:[%s1769_s6 + $0xa8] sm:$0xff] %vm745_vm0, %v1038_v29  ;;  %vm959_vm13 = vcmp.gt.f32.partialorder %v927_v26, 0.0  ;;  %v991_v32 = vmul.f32 0.25, %v927_v26  ;;  %v1320_v36 = vadd.f32 %v1319_v30, %v1318_v24  ;;  %v1368_v37 = vadd.f32 %v1367_v31, %v1366_v25 }
 0x11d   : > { %vm975_vm14 = vcmp.gt.f32.partialorder %v943_v27, 0.0  ;;  %v1007_v33 = vmul.f32 0.25, %v943_v27  ;;  %v889_v34 = vld [vmem:[%s1769_s6 + $0x38] sm:$0xff]  ;;  %v1321_v38 = vpop.f32.mrf.mxu0  ;;  %v1369_v39 = vpop.f32.mrf.mxu1 }
 0x11e   : > { %v905_v35 = vld [vmem:[%s1769_s6 + $0xb8] sm:$0xff]  ;;  %v1023_v40 = vsel %vm959_vm13, %v927_v26, %v991_v32  ;;  %v928_v42 = vadd.f32 %v1782_v62, %v889_v34  ;;  %755 = vst.msk [vmem:[%s1769_s6 + $0x48] sm:$0xff] %vm745_vm0, %v1320_v36  ;;  %771 = vst.msk [vmem:[%s1769_s6 + $0xc8] sm:$0xff] %vm745_vm0, %v1368_v37 }
 0x11f   : > { %v1039_v41 = vsel %vm975_vm14, %v943_v27, %v1007_v33  ;;  %v944_v43 = vadd.f32 %v1782_v62, %v905_v35  ;;  %1056 = vst.msk [vmem:[%s1769_s6 + $0x30] sm:$0xff] %vm745_vm0, %v1023_v40  ;;  %v1322_v44 = vpop.f32.mrf.mxu0  ;;  %v1370_v45 = vpop.f32.mrf.mxu1 }
 0x120   : > { %1072 = vst.msk [vmem:[%s1769_s6 + $0xb0] sm:$0xff] %vm745_vm0, %v1039_v41  ;;  %vm960_vm15 = vcmp.gt.f32.partialorder %v928_v42, 0.0  ;;  %v992_v46 = vmul.f32 0.25, %v928_v42  ;;  %v1323_v50 = vadd.f32 %v1322_v44, %v1321_v38  ;;  %v1371_v51 = vadd.f32 %v1370_v45, %v1369_v39 }
 0x121   : > { %vm976_vm1 = vcmp.gt.f32.partialorder %v944_v43, 0.0  ;;  %v1008_v47 = vmul.f32 0.25, %v944_v43  ;;  %v890_v48 = vld [vmem:[%s1769_s6 + $0x40] sm:$0xff]  ;;  %v1324_v52 = vpop.f32.mrf.mxu0  ;;  %v1372_v53 = vpop.f32.mrf.mxu1 }
 0x122   : > { %v906_v49 = vld [vmem:[%s1769_s6 + $0xc0] sm:$0xff]  ;;  %v1024_v54 = vsel %vm960_vm15, %v928_v42, %v992_v46  ;;  %v929_v56 = vadd.f32 %v1782_v62, %v890_v48  ;;  %756 = vst.msk [vmem:[%s1769_s6 + $0x50] sm:$0xff] %vm745_vm0, %v1323_v50  ;;  %772 = vst.msk [vmem:[%s1769_s6 + $0xd0] sm:$0xff] %vm745_vm0, %v1371_v51 }
 0x123   : > { %v1040_v55 = vsel %vm976_vm1, %v944_v43, %v1008_v47  ;;  %v945_v57 = vadd.f32 %v1782_v62, %v906_v49  ;;  %1057 = vst.msk [vmem:[%s1769_s6 + $0x38] sm:$0xff] %vm745_vm0, %v1024_v54  ;;  %v1325_v58 = vpop.f32.mrf.mxu0  ;;  %v1373_v59 = vpop.f32.mrf.mxu1 }
 0x124   : > { %1073 = vst.msk [vmem:[%s1769_s6 + $0xb8] sm:$0xff] %vm745_vm0, %v1040_v55  ;;  %vm961_vm2 = vcmp.gt.f32.partialorder %v929_v56, 0.0  ;;  %v993_v60 = vmul.f32 0.25, %v929_v56  ;;  %v1326_v63 = vadd.f32 %v1325_v58, %v1324_v52  ;;  %v1374_v0 = vadd.f32 %v1373_v59, %v1372_v53 }
 0x125   : > { %vm977_vm3 = vcmp.gt.f32.partialorder %v945_v57, 0.0  ;;  %v1009_v61 = vmul.f32 0.25, %v945_v57  ;;  %v1327_v1 = vpop.f32.mrf.mxu0  ;;  %v1375_v2 = vpop.f32.mrf.mxu1  ;;  %v891_v5 = vld [vmem:[%s1769_s6 + $0x48] sm:$0xff] }
 0x126   : > { %v1025_v3 = vsel %vm961_vm2, %v929_v56, %v993_v60  ;;  %v907_v6 = vld [vmem:[%s1769_s6 + $0xc8] sm:$0xff]  ;;  %v930_v7 = vadd.f32 %v1782_v62, %v891_v5  ;;  %757 = vst.msk [vmem:[%s1769_s6 + $0x58] sm:$0xff] %vm745_vm0, %v1326_v63  ;;  %773 = vst.msk [vmem:[%s1769_s6 + $0xd8] sm:$0xff] %vm745_vm0, %v1374_v0 }
 0x127   : > { %v1041_v4 = vsel %vm977_vm3, %v945_v57, %v1009_v61  ;;  %1058 = vst.msk [vmem:[%s1769_s6 + $0x40] sm:$0xff] %vm745_vm0, %v1025_v3  ;;  %v946_v8 = vadd.f32 %v1782_v62, %v907_v6  ;;  %v1328_v9 = vpop.f32.mrf.mxu0  ;;  %v1376_v10 = vpop.f32.mrf.mxu1 }
 0x128   : > { %1074 = vst.msk [vmem:[%s1769_s6 + $0xc0] sm:$0xff] %vm745_vm0, %v1041_v4  ;;  %v1329_v11 = vadd.f32 %v1328_v9, %v1327_v1  ;;  %v1377_v12 = vadd.f32 %v1376_v10, %v1375_v2  ;;  %vm962_vm4 = vcmp.gt.f32.partialorder %v930_v7, 0.0  ;;  %v994_v13 = vmul.f32 0.25, %v930_v7 }
 0x129   : > { %vm978_vm5 = vcmp.gt.f32.partialorder %v946_v8, 0.0  ;;  %v1010_v14 = vmul.f32 0.25, %v946_v8  ;;  %v1330_v15 = vpop.f32.mrf.mxu0  ;;  %v1378_v16 = vpop.f32.mrf.mxu1  ;;  %v892_v17 = vld [vmem:[%s1769_s6 + $0x50] sm:$0xff] }
 0x12a   : > { %v908_v18 = vld [vmem:[%s1769_s6 + $0xd0] sm:$0xff]  ;;  %758 = vst.msk [vmem:[%s1769_s6 + $0x60] sm:$0xff] %vm745_vm0, %v1329_v11  ;;  %774 = vst.msk [vmem:[%s1769_s6 + $0xe0] sm:$0xff] %vm745_vm0, %v1377_v12  ;;  %v1026_v19 = vsel %vm962_vm4, %v930_v7, %v994_v13  ;;  %v931_v21 = vadd.f32 %v1782_v62, %v892_v17 }
 0x12b   : > { %v1042_v20 = vsel %vm978_vm5, %v946_v8, %v1010_v14  ;;  %v947_v22 = vadd.f32 %v1782_v62, %v908_v18  ;;  %v1331_v23 = vpop.f32.mrf.mxu0  ;;  %v1379_v24 = vpop.f32.mrf.mxu1  ;;  %1059 = vst.msk [vmem:[%s1769_s6 + $0x48] sm:$0xff] %vm745_vm0, %v1026_v19 }
 0x12c   : > { %1075 = vst.msk [vmem:[%s1769_s6 + $0xc8] sm:$0xff] %vm745_vm0, %v1042_v20  ;;  %v1332_v25 = vadd.f32 %v1331_v23, %v1330_v15  ;;  %v1380_v26 = vadd.f32 %v1379_v24, %v1378_v16  ;;  %vm963_vm6 = vcmp.gt.f32.partialorder %v931_v21, 0.0  ;;  %v995_v27 = vmul.f32 0.25, %v931_v21 }
 0x12d   : > { %vm979_vm7 = vcmp.gt.f32.partialorder %v947_v22, 0.0  ;;  %v1011_v28 = vmul.f32 0.25, %v947_v22  ;;  %v1333_v29 = vpop.f32.mrf.mxu0  ;;  %v1381_v30 = vpop.f32.mrf.mxu1  ;;  %v893_v31 = vld [vmem:[%s1769_s6 + $0x58] sm:$0xff] }
 0x12e   : > { %v909_v32 = vld [vmem:[%s1769_s6 + $0xd8] sm:$0xff]  ;;  %759 = vst.msk [vmem:[%s1769_s6 + $0x68] sm:$0xff] %vm745_vm0, %v1332_v25  ;;  %775 = vst.msk [vmem:[%s1769_s6 + $0xe8] sm:$0xff] %vm745_vm0, %v1380_v26  ;;  %v1027_v33 = vsel %vm963_vm6, %v931_v21, %v995_v27  ;;  %v932_v35 = vadd.f32 %v1782_v62, %v893_v31 }
 0x12f   : > { %v1043_v34 = vsel %vm979_vm7, %v947_v22, %v1011_v28  ;;  %v948_v36 = vadd.f32 %v1782_v62, %v909_v32  ;;  %v1334_v37 = vpop.f32.mrf.mxu0  ;;  %v1382_v38 = vpop.f32.mrf.mxu1  ;;  %1060 = vst.msk [vmem:[%s1769_s6 + $0x50] sm:$0xff] %vm745_vm0, %v1027_v33 }
 0x130   : > { %1076 = vst.msk [vmem:[%s1769_s6 + $0xd0] sm:$0xff] %vm745_vm0, %v1043_v34  ;;  %v1335_v39 = vadd.f32 %v1334_v37, %v1333_v29  ;;  %v1383_v40 = vadd.f32 %v1382_v38, %v1381_v30  ;;  %vm964_vm8 = vcmp.gt.f32.partialorder %v932_v35, 0.0  ;;  %v996_v41 = vmul.f32 0.25, %v932_v35 }
 0x131   : > { %vm980_vm9 = vcmp.gt.f32.partialorder %v948_v36, 0.0  ;;  %v1012_v42 = vmul.f32 0.25, %v948_v36  ;;  %v894_v43 = vld [vmem:[%s1769_s6 + $0x60] sm:$0xff]  ;;  %v1336_v45 = vpop.f32.mrf.mxu0  ;;  %v1384_v46 = vpop.f32.mrf.mxu1 }
 0x132   : > { %v910_v44 = vld [vmem:[%s1769_s6 + $0xe0] sm:$0xff]  ;;  %v933_v47 = vadd.f32 %v1782_v62, %v894_v43  ;;  %760 = vst.msk [vmem:[%s1769_s6 + $0x70] sm:$0xff] %vm745_vm0, %v1335_v39  ;;  %776 = vst.msk [vmem:[%s1769_s6 + $0xf0] sm:$0xff] %vm745_vm0, %v1383_v40  ;;  %v1028_v49 = vsel %vm964_vm8, %v932_v35, %v996_v41 }
 0x133   : > { %v949_v48 = vadd.f32 %v1782_v62, %v910_v44  ;;  %v1044_v50 = vsel %vm980_vm9, %v948_v36, %v1012_v42  ;;  %v1337_v51 = vpop.f32.mrf.mxu0  ;;  %v1385_v52 = vpop.f32.mrf.mxu1  ;;  %1061 = vst.msk [vmem:[%s1769_s6 + $0x58] sm:$0xff] %vm745_vm0, %v1028_v49 }
 0x134   : > { %1077 = vst.msk [vmem:[%s1769_s6 + $0xd8] sm:$0xff] %vm745_vm0, %v1044_v50  ;;  %vm965_vm10 = vcmp.gt.f32.partialorder %v933_v47, 0.0  ;;  %v997_v53 = vmul.f32 0.25, %v933_v47  ;;  %v1338_v57 = vadd.f32 %v1337_v51, %v1336_v45  ;;  %v1386_v58 = vadd.f32 %v1385_v52, %v1384_v46 }
 0x135   : > { %vm981_vm11 = vcmp.gt.f32.partialorder %v949_v48, 0.0  ;;  %v1013_v54 = vmul.f32 0.25, %v949_v48  ;;  %v895_v55 = vld [vmem:[%s1769_s6 + $0x68] sm:$0xff] }
 0x136   : > { %v911_v56 = vld [vmem:[%s1769_s6 + $0xe8] sm:$0xff]  ;;  %v1029_v59 = vsel %vm965_vm10, %v933_v47, %v997_v53  ;;  %v934_v61 = vadd.f32 %v1782_v62, %v895_v55  ;;  %761 = vst.msk [vmem:[%s1769_s6 + $0x78] sm:$0xff] %vm745_vm0, %v1338_v57  ;;  %777 = vst.msk [vmem:[%s1769_s6 + $0xf8] sm:$0xff] %vm745_vm0, %v1386_v58 }
 0x137   : > { %v1045_v60 = vsel %vm981_vm11, %v949_v48, %v1013_v54  ;;  %v950_v63 = vadd.f32 %v1782_v62, %v911_v56  ;;  %1062 = vst.msk [vmem:[%s1769_s6 + $0x60] sm:$0xff] %vm745_vm0, %v1029_v59 }
 0x138   : > { %1078 = vst.msk [vmem:[%s1769_s6 + $0xe0] sm:$0xff] %vm745_vm0, %v1045_v60  ;;  %vm966_vm12 = vcmp.gt.f32.partialorder %v934_v61, 0.0  ;;  %v998_v0 = vmul.f32 0.25, %v934_v61 }
 0x139   : > { %vm982_vm13 = vcmp.gt.f32.partialorder %v950_v63, 0.0  ;;  %v1014_v1 = vmul.f32 0.25, %v950_v63  ;;  %v896_v2 = vld [vmem:[%s1769_s6 + $0x70] sm:$0xff] }
 0x13a   : > { %v912_v3 = vld [vmem:[%s1769_s6 + $0xf0] sm:$0xff]  ;;  %v1030_v4 = vsel %vm966_vm12, %v934_v61, %v998_v0  ;;  %v935_v6 = vadd.f32 %v1782_v62, %v896_v2 }
 0x13b   : > { %v1046_v5 = vsel %vm982_vm13, %v950_v63, %v1014_v1  ;;  %v951_v7 = vadd.f32 %v1782_v62, %v912_v3  ;;  %1063 = vst.msk [vmem:[%s1769_s6 + $0x68] sm:$0xff] %vm745_vm0, %v1030_v4 }
 0x13c   : > { %1079 = vst.msk [vmem:[%s1769_s6 + $0xe8] sm:$0xff] %vm745_vm0, %v1046_v5  ;;  %vm967_vm14 = vcmp.gt.f32.partialorder %v935_v6, 0.0  ;;  %v999_v8 = vmul.f32 0.25, %v935_v6 }
 0x13d   : > { %vm983_vm15 = vcmp.gt.f32.partialorder %v951_v7, 0.0  ;;  %v1015_v9 = vmul.f32 0.25, %v951_v7  ;;  %v897_v12 = vld [vmem:[%s1769_s6 + $0x78] sm:$0xff] }
 0x13e   : > { %v1031_v10 = vsel %vm967_vm14, %v935_v6, %v999_v8  ;;  %v913_v13 = vld [vmem:[%s1769_s6 + $0xf8] sm:$0xff]  ;;  %v936_v14 = vadd.f32 %v1782_v62, %v897_v12 }
 0x13f   : > { %v1047_v11 = vsel %vm983_vm15, %v951_v7, %v1015_v9  ;;  %1064 = vst.msk [vmem:[%s1769_s6 + $0x70] sm:$0xff] %vm745_vm0, %v1031_v10  ;;  %v952_v15 = vadd.f32 %v1782_v62, %v913_v13 }
 0x140   : > { %1080 = vst.msk [vmem:[%s1769_s6 + $0xf0] sm:$0xff] %vm745_vm0, %v1047_v11  ;;  %vm968_vm1 = vcmp.gt.f32.partialorder %v936_v14, 0.0  ;;  %v1000_v16 = vmul.f32 0.25, %v936_v14 }
 0x141   : > { %vm984_vm2 = vcmp.gt.f32.partialorder %v952_v15, 0.0  ;;  %v1016_v17 = vmul.f32 0.25, %v952_v15 }
 0x142   : > { %v1032_v18 = vsel %vm968_vm1, %v936_v14, %v1000_v16 }
 0x143   : > { %v1048_v19 = vsel %vm984_vm2, %v952_v15, %v1016_v17  ;;  %1065 = vst.msk [vmem:[%s1769_s6 + $0x78] sm:$0xff] %vm745_vm0, %v1032_v18 }
 0x144   : > { %1081 = vst.msk [vmem:[%s1769_s6 + $0xf8] sm:$0xff] %vm745_vm0, %v1048_v19 }
 0x145   : > { %1537 = shalt.err (!%p1534_p5)
}
 0x146   : > { %s1538_s26 = scalar_lea.hbm %s1969_s11, 4096  ;;  %s1542_s30 = scalar_lea.hbm %s2027_s3, 8192 }
 0x147   : > { %p1539_p6 = scmp.ne.s32.totalorder %s1969_s11, %s1538_s26  ;;  %p1543_p10 = scmp.lt.s32.totalorder %s1969_s11, %s2027_s3 }
 0x148   : > { %p1544_p11 = scmp.lt.s32.totalorder %s1542_s30, %s1538_s26 }
 0x149   : > { %p1540_p7 = pnand %p1539_p6, %p1665_p4 }
 0x14a   : > { %p1545_p12 = por %p1544_p11, %p1543_p10 }
 0x14b   : > { %p1541_p9 = pneg %p1540_p7 }
 0x14d   : > { %p1546_p13 = pnand %p1545_p12, %p1541_p9 }
 0x14f   : > { %1549 = shalt.err (!%p1546_p13)
}
 0x150   : > { %s1603_s5 = smov 128   ;;  %s1604_s7 = smov 8  }
 0x151   : > { %1403 = dma.vmem_to_hbm [thread:$0]  (%p1665_p4), %s1971_s8, 4096, %s1969_s11, %s1979_s15, %s1603_s5, %s1603_s5, %s1604_s7  }
 0x152 PF: > { %p1409_p0 = scmp.ge.s32.totalorder %s1600_s17, 2  ;;  %s1112_s28 = sand.u32 1, %s1580_s12  }
 0x153   : > { %s1113_s9 = scalar_lea.sflag [#allocation3], %s1112_s28 }
 0x154   : > { %p1406_p1 = pnand %p1409_p0, %p1672_p8 }
 0x156   : > { %p1407_p2 = pneg %p1406_p1 }
 0x158   : > { %1575 = dma.done.wait (%p1407_p2), %s1113_s9, 4096  }
 0x159   : > { %1577 = vsyncadd (%p1407_p2), %s1113_s9, 4294963200  ;;  %s16_s17 = sadd.s32 1, %s1600_s17   ;;  %s2030_s12 = smov %s1584_s13 }
 0x15a   : > { %p13_p3 = scmp.ge.s32.totalorder %s16_s17, 4   ;;  %s2031_s13 = smov %s1588_s14 }
 0x15b   : > { %s2032_s14 = smov %s1678_s25  ;;  %s2033_s15 = smov %s1596_s16 }
 0x15c   : > { %s2034_s16 = smov %s2036_s20  ;;  %15 = sbr.rel (!%p13_p3) target bundleno = 4 (0x4), region = 85 }
 0x161   :  { %1118 = vsyncpa [#allocation3], 1 }
 0x162   :  { %1120 = vsyncpa [#allocation3 + $0x1], 1 }

</bundles_post_ra>
